<compile_context>
chip_gen: v6e
topology: v6e:2x2x1
jax: 0.10.0
libtpu: 0.0.40
codegen_flags: <defaults>
</compile_context>

<pallas_src>
import functools

import jax
import jax.numpy as jnp
from jax.experimental import pallas as pl
from jax.experimental.pallas import tpu as pltpu


# --------------------------------------------------------------------------
# VMEM-aware tile sizing
# --------------------------------------------------------------------------
def _vmem_capacity_bytes():
    try:
        return int(pltpu.get_tpu_info().vmem_capacity_bytes)
    except Exception:
        return 64 << 20  # conservative (v7x physical VMEM per TC)


def _x_block_budget_bytes():
    # Streamed x block target.  Measured HBM roofline saturates at ~1-4 MiB
    # tiles; larger blocks only expose a long pipeline prologue, reduce grid
    # steps for v7x's 2 TCs, and raise VMEM pressure once f32 temporaries are
    # counted.  Also never exceed 1/16 of physical VMEM.
    cap = _vmem_capacity_bytes()
    return min(4 << 20, max(cap // 16, 1 << 20))


def _vmem_limit_bytes(block_bytes):
    # Live VMEM ~= in/out double buffers (4 blocks) + ~3 block-sized f32
    # temporaries; pad generously but stay well under physical VMEM.
    cap = _vmem_capacity_bytes()
    need = 8 * int(block_bytes) + (4 << 20)
    return int(min(max(need, 32 << 20), cap * 3 // 4))


def _pick_row_tile(n_rows, lane_width, itemsize):
    """Rows-per-block for an (N, lane_width) streaming kernel."""
    budget = _x_block_budget_bytes()
    t = budget // max(lane_width * itemsize, 1)
    t = (t // 8) * 8
    if t < 8:
        # Very wide rows: even the minimum 8-row block exceeds the streaming
        # budget; use it anyway (vmem_limit is sized from the actual block).
        # TODO(synk): lane-split two-pass reduction for extremely large C.
        t = 8
    # Keep the grid at >= ~8 steps when the array is large enough
    # (megacore sharding on v7x + pipeline warmup).
    cap = max(8, ((pl.cdiv(n_rows, 8) + 7) // 8) * 8)
    t = min(t, cap)
    if t >= n_rows:
        return n_rows  # single full-dim block (exempt from 8-divisibility)
    return t


def _pick_lane_tile(hw, c, batch, itemsize):
    """Lanes-per-block for a (C, HW) sublane-reduce kernel."""
    t = _x_block_budget_bytes() // max(c * itemsize, 1)
    t = max(128, t - (t % 128))
    if batch < 8 and hw > 128:
        # Best-effort: keep batch * cdiv(hw, t) >= ~8 grid steps.
        want = pl.cdiv(8, max(batch, 1))
        t_cap = max(128, (pl.cdiv(hw, want) // 128) * 128)
        t = min(t, t_cap)
    if t >= hw:
        return hw  # single full-dim block (exempt from 128-divisibility)
    return t


# --------------------------------------------------------------------------
# Kernels (all use the centered two-pass variance, like PyTorch)
# --------------------------------------------------------------------------
def _ln_rows_kernel(x_ref, w_ref, b_ref, o_ref, *, eps):
    """channels_last fallback: normalize over the lane (last) axis."""
    x = x_ref[...].astype(jnp.float32)                 # (tm, C)
    c = x.shape[-1]
    mean = jnp.sum(x, axis=-1, keepdims=True) * (1.0 / c)
    xc = x - mean
    var = jnp.sum(xc * xc, axis=-1, keepdims=True) * (1.0 / c)
    inv = jax.lax.rsqrt(var + eps)
    o_ref[...] = (xc * inv * w_ref[...] + b_ref[...]).astype(o_ref.dtype)


def _ln_packed_kernel(x_ref, w_ref, b_ref, red_ref, bcast_ref, o_ref, *, eps):
    """channels_last, small C: p = 128//C rows packed per 128-lane group.

    Factored segmented stats (per perf review): `x @ red` with red (pC, p)
    reduces each C-lane segment to a per-segment mean; `stats @ bcast` with
    bcast (p, pC) 0/1 broadcasts them back.  MXU FLOPs drop by ~C vs. a dense
    (pC, pC) block-diagonal matmul, and loads/stores stay lane-dense.
    """
    x = x_ref[...].astype(jnp.float32)                 # (tm, pC)
    red = red_ref[...]                                  # (pC, p)   1/C per seg
    bc = bcast_ref[...]                                 # (p, pC)   0/1
    mean_p = jnp.dot(x, red, preferred_element_type=jnp.float32)      # (tm, p)
    mean = jnp.dot(mean_p, bc, preferred_element_type=jnp.float32)    # (tm, pC)
    xc = x - mean
    var_p = jnp.dot(xc * xc, red, preferred_element_type=jnp.float32) # (tm, p)
    inv_p = jax.lax.rsqrt(var_p + eps)
    inv = jnp.dot(inv_p, bc, preferred_element_type=jnp.float32)      # (tm, pC)
    o_ref[...] = (xc * inv * w_ref[...] + b_ref[...]).astype(o_ref.dtype)


def _ln_cfirst_kernel(x_ref, w_ref, b_ref, o_ref, *, eps):
    """channels_first, native layout: block is (C, t_hw); reduce over C
    (sublanes), H*W stays in lanes -> dense vector stores."""
    x = x_ref[...].astype(jnp.float32)                 # (C, t_hw)
    c = x.shape[0]
    mean = jnp.sum(x, axis=0, keepdims=True) * (1.0 / c)
    xc = x - mean
    var = jnp.sum(xc * xc, axis=0, keepdims=True) * (1.0 / c)
    inv = jax.lax.rsqrt(var + eps)
    o_ref[...] = (xc * inv * w_ref[...] + b_ref[...]).astype(o_ref.dtype)


# --------------------------------------------------------------------------
# Cached constants
# --------------------------------------------------------------------------
@functools.lru_cache(maxsize=None)
def _segment_matrices(c, p):
    pc = p * c
    lane_seg = jnp.arange(pc, dtype=jnp.int32) // c
    seg_ids = jnp.arange(p, dtype=jnp.int32)
    red = (lane_seg[:, None] == seg_ids[None, :]).astype(jnp.float32) / float(c)
    bcast = (seg_ids[:, None] == lane_seg[None, :]).astype(jnp.float32)
    return red, bcast                                   # (pc, p), (p, pc)


# --------------------------------------------------------------------------
# pallas_call wrappers
# --------------------------------------------------------------------------
def _layernorm_rows_plain(x2d, w_row, b_row, eps):
    n, c = x2d.shape
    itemsize = x2d.dtype.itemsize
    tm = _pick_row_tile(n, c, itemsize)
    block_bytes = tm * c * itemsize
    return pl.pallas_call(
        functools.partial(_ln_rows_kernel, eps=eps),
        out_shape=jax.ShapeDtypeStruct((n, c), x2d.dtype),
        grid_spec=pltpu.PrefetchScalarGridSpec(
            num_scalar_prefetch=0,
            grid=(pl.cdiv(n, tm),),
            in_specs=[
                pl.BlockSpec((tm, c), lambda i: (i, 0)),
                pl.BlockSpec((1, c), lambda i: (0, 0)),
                pl.BlockSpec((1, c), lambda i: (0, 0)),
            ],
            out_specs=pl.BlockSpec((tm, c), lambda i: (i, 0)),
        ),
        compiler_params=pltpu.CompilerParams(
            dimension_semantics=("parallel",),
            vmem_limit_bytes=_vmem_limit_bytes(block_bytes)),
    )(x2d, w_row, b_row)


def _layernorm_rows_packed(x2d, w_pack, b_pack, eps, p):
    n, c = x2d.shape
    pc = p * c                                  # == 128
    npk = n // p
    xp = x2d.reshape(npk, pc)                   # free reshape (contiguous)
    itemsize = x2d.dtype.itemsize
    tm = _pick_row_tile(npk, pc, itemsize)
    block_bytes = tm * pc * itemsize
    red, bcast = _segment_matrices(c, p)
    out = pl.pallas_call(
        functools.partial(_ln_packed_kernel, eps=eps),
        out_shape=jax.ShapeDtypeStruct((npk, pc), x2d.dtype),
        grid_spec=pltpu.PrefetchScalarGridSpec(
            num_scalar_prefetch=0,
            grid=(pl.cdiv(npk, tm),),
            in_specs=[
                pl.BlockSpec((tm, pc), lambda i: (i, 0)),
                pl.BlockSpec((1, pc), lambda i: (0, 0)),
                pl.BlockSpec((1, pc), lambda i: (0, 0)),
                pl.BlockSpec((pc, p), lambda i: (0, 0)),
                pl.BlockSpec((p, pc), lambda i: (0, 0)),
            ],
            out_specs=pl.BlockSpec((tm, pc), lambda i: (i, 0)),
        ),
        compiler_params=pltpu.CompilerParams(
            dimension_semantics=("parallel",),
            vmem_limit_bytes=_vmem_limit_bytes(block_bytes)),
    )(xp, w_pack, b_pack, red, bcast)
    return out.reshape(n, c)


def _layernorm_channels_first(x, w_col, b_col, eps):
    """LayerNorm over dim 1 of an NCHW array, in native layout (no transpose)."""
    b, c, h, w = x.shape
    hw = h * w
    x3 = x.reshape(b, c, hw)                    # free reshape (contiguous)
    itemsize = x.dtype.itemsize
    t_hw = _pick_lane_tile(hw, c, b, itemsize)
    block_bytes = c * t_hw * itemsize
    out = pl.pallas_call(
        functools.partial(_ln_cfirst_kernel, eps=eps),
        out_shape=jax.ShapeDtypeStruct((b, c, hw), x.dtype),
        grid_spec=pltpu.PrefetchScalarGridSpec(
            num_scalar_prefetch=0,
            grid=(b, pl.cdiv(hw, t_hw)),
            in_specs=[
                pl.BlockSpec((None, c, t_hw), lambda i, j: (i, 0, j)),
                pl.BlockSpec((c, 1), lambda i, j: (0, 0)),
                pl.BlockSpec((c, 1), lambda i, j: (0, 0)),
            ],
            out_specs=pl.BlockSpec((None, c, t_hw), lambda i, j: (i, 0, j)),
        ),
        compiler_params=pltpu.CompilerParams(
            dimension_semantics=("parallel", "parallel"),
            vmem_limit_bytes=_vmem_limit_bytes(block_bytes)),
    )(x3, w_col, b_col)
    return out.reshape(b, c, h, w)


def _rows_tail_jnp(x2d, weight, bias, eps):
    """Plain-jnp LayerNorm for a tiny (< p rows) ragged tail."""
    x = x2d.astype(jnp.float32)
    mean = jnp.mean(x, axis=-1, keepdims=True)
    xc = x - mean
    var = jnp.mean(xc * xc, axis=-1, keepdims=True)
    y = xc * jax.lax.rsqrt(var + eps) * weight.astype(jnp.float32) \
        + bias.astype(jnp.float32)
    return y.astype(x2d.dtype)


# --------------------------------------------------------------------------
# Module
# --------------------------------------------------------------------------
class LayerNorm:
    """JAX/Pallas port of the PyTorch LayerNorm (channels_last / channels_first)."""

    def __init__(self, normalized_shape, eps=1e-6, data_format="channels_last"):
        if data_format not in ("channels_last", "channels_first"):
            raise NotImplementedError
        self.eps = float(eps)
        self.data_format = data_format
        self.normalized_shape = (normalized_shape,)
        # Matches nn.Parameter(torch.ones/zeros(normalized_shape)).
        self.weight = jnp.ones((normalized_shape,), dtype=jnp.float32)
        self.bias = jnp.zeros((normalized_shape,), dtype=jnp.float32)
        self._param_cache = {}

    def _prepared(self, kind, p):
        """Cache reshaped / tiled f32 weight & bias (rebuilt only if params change)."""
        key = (kind, p, id(self.weight), id(self.bias))
        hit = self._param_cache.get(key)
        if hit is not None:
            return hit
        c = self.normalized_shape[0]
        w = self.weight.astype(jnp.float32)
        b = self.bias.astype(jnp.float32)
        if kind == "rows":
            val = (w.reshape(1, c), b.reshape(1, c))
        elif kind == "packed":
            val = (jnp.tile(w, p).reshape(1, p * c),
                   jnp.tile(b, p).reshape(1, p * c))
        else:  # "cfirst"
            val = (w.reshape(c, 1), b.reshape(c, 1))
        self._param_cache[key] = val
        return val

    def __call__(self, x):
        c = self.normalized_shape[0]
        if self.data_format == "channels_last":
            assert x.shape[-1] == c
            lead = x.shape[:-1]
            x2d = x.reshape(-1, c)
            n = x2d.shape[0]
            p = 128 // c if (c < 128 and 128 % c == 0) else 0
            if p >= 2 and n >= p:
                wp, bp = self._prepared("packed", p)
                n_main = (n // p) * p
                if n_main == n:
                    y = _layernorm_rows_packed(x2d, wp, bp, self.eps, p)
                else:
                    # Ragged N: largest p-divisible prefix stays lane-dense on
                    # the packed kernel; the tiny (<p rows) tail goes through
                    # plain jnp and is concatenated back.
                    y_main = _layernorm_rows_packed(
                        x2d[:n_main], wp, bp, self.eps, p)
                    y_tail = _rows_tail_jnp(
                        x2d[n_main:], self.weight, self.bias, self.eps)
                    y = jnp.concatenate([y_main, y_tail], axis=0)
            else:
                wr, br = self._prepared("rows", 1)
                y = _layernorm_rows_plain(x2d, wr, br, self.eps)
            return y.reshape(*lead, c)
        else:
            assert x.ndim == 4 and x.shape[1] == c
            wc, bc_ = self._prepared("cfirst", 1)
            return _layernorm_channels_first(x, wc, bc_, self.eps)


# --------------------------------------------------------------------------
# References + test
# --------------------------------------------------------------------------
def _ref_channels_last(x, w, b, eps):
    mean = jnp.mean(x, axis=-1, keepdims=True)
    var = jnp.mean((x - mean) ** 2, axis=-1, keepdims=True)
    return (x - mean) / jnp.sqrt(var + eps) * w + b


def _ref_channels_first(x, w, b, eps):
    u = jnp.mean(x, axis=1, keepdims=True)
    s = jnp.mean((x - u) ** 2, axis=1, keepdims=True)
    xn = (x - u) / jnp.sqrt(s + eps)
    return w[None, :, None, None] * xn + b[None, :, None, None]


if __name__ == "__main__":
    key = jax.random.PRNGKey(0)
    k1, k2, k3, kw, kb = jax.random.split(key, 5)

    C = 32
    # Non-trivial affine params to exercise the scale/shift path.
    w_test = 1.0 + 0.1 * jax.random.normal(kw, (C,), dtype=jnp.float32)
    b_test = 0.1 * jax.random.normal(kb, (C,), dtype=jnp.float32)

    # channels_first: native NCHW, sublane-reduce kernel (no transposes).
    x_cf = jax.random.normal(k1, (2, C, 16, 16), dtype=jnp.float32)
    ln_cf = LayerNorm(C, eps=1e-6, data_format="channels_first")
    ln_cf.weight, ln_cf.bias = w_test, b_test
    y_cf = jax.block_until_ready(ln_cf(x_cf))
    ref_cf = _ref_channels_first(x_cf, w_test, b_test, ln_cf.eps)
    assert y_cf.shape == x_cf.shape
    assert jnp.allclose(y_cf, ref_cf, atol=1e-4, rtol=1e-4)

    # channels_last, small C: packed lane-dense kernel (N divisible by 128//C).
    x_cl = jax.random.normal(k2, (2, 8, 8, C), dtype=jnp.float32)
    ln_cl = LayerNorm(C, eps=1e-6, data_format="channels_last")
    ln_cl.weight, ln_cl.bias = w_test, b_test
    y_cl = jax.block_until_ready(ln_cl(x_cl))
    ref_cl = _ref_channels_last(x_cl, w_test, b_test, ln_cl.eps)
    assert y_cl.shape == x_cl.shape
    assert jnp.allclose(y_cl, ref_cl, atol=1e-4, rtol=1e-4)

    # channels_last with ragged N (126 rows): packed prefix + tiny jnp tail.
    x_rg = jax.random.normal(k3, (2, 7, 9, C), dtype=jnp.float32)
    y_rg = jax.block_until_ready(ln_cl(x_rg))
    ref_rg = _ref_channels_last(x_rg, w_test, b_test, ln_cl.eps)
    assert y_rg.shape == x_rg.shape
    assert jnp.allclose(y_rg, ref_rg, atol=1e-4, rtol=1e-4)

    print("KERNEL_OK")
</pallas_src>

<mosaic_0001>
module attributes {stable_mosaic.version = 11 : i64} {
  func.func @_ln_cfirst_kernel(%arg0: i32, %arg1: i32, %arg2: memref<1x32x128xf32, #tpu.memory_space<vmem>>, %arg3: memref<32x1xf32, #tpu.memory_space<vmem>>, %arg4: memref<32x1xf32, #tpu.memory_space<vmem>>, %arg5: memref<1x32x128xf32, #tpu.memory_space<vmem>>) attributes {dimension_semantics = [#tpu.dimension_semantics<parallel>, #tpu.dimension_semantics<parallel>], iteration_bounds = array<i64: 2, 2>, scalar_prefetch = 0 : i64, scratch_operands = 0 : i64, tpu.core_type = #tpu.core_type<tc>, window_params = [{transform_indices = @transform_0, window_bounds = array<i64: 1, 32, 128>}, {pipeline_mode = #tpu.pipeline_mode<synchronous>, transform_indices = @transform_1, window_bounds = array<i64: 32, 1>}, {pipeline_mode = #tpu.pipeline_mode<synchronous>, transform_indices = @transform_2, window_bounds = array<i64: 32, 1>}, {transform_indices = @transform_3, window_bounds = array<i64: 1, 32, 128>}]} {
    %c0 = arith.constant 0 : index
    %c0_0 = arith.constant 0 : index
    %c0_1 = arith.constant 0 : index
    %0 = vector.load %arg2[%c0, %c0_0, %c0_1] : memref<1x32x128xf32, #tpu.memory_space<vmem>>, vector<1x32x128xf32>
    %1 = vector.shape_cast %0 : vector<1x32x128xf32> to vector<32x128xf32>
    %cst = arith.constant dense<0.000000e+00> : vector<128xf32>
    %2 = vector.multi_reduction <add>, %1, %cst [0] : vector<32x128xf32> to vector<128xf32>
    %3 = vector.shape_cast %2 : vector<128xf32> to vector<1x128xf32>
    %cst_2 = arith.constant 3.125000e-02 : f32
    %4 = vector.broadcast %cst_2 : f32 to vector<1x128xf32>
    %5 = arith.mulf %3, %4 : vector<1x128xf32>
    %6 = vector.broadcast %5 : vector<1x128xf32> to vector<32x128xf32>
    %7 = arith.subf %1, %6 : vector<32x128xf32>
    %8 = arith.mulf %7, %7 : vector<32x128xf32>
    %cst_3 = arith.constant dense<0.000000e+00> : vector<128xf32>
    %9 = vector.multi_reduction <add>, %8, %cst_3 [0] : vector<32x128xf32> to vector<128xf32>
    %10 = vector.shape_cast %9 : vector<128xf32> to vector<1x128xf32>
    %cst_4 = arith.constant 3.125000e-02 : f32
    %11 = vector.broadcast %cst_4 : f32 to vector<1x128xf32>
    %12 = arith.mulf %10, %11 : vector<1x128xf32>
    %cst_5 = arith.constant 9.99999997E-7 : f32
    %13 = vector.broadcast %cst_5 : f32 to vector<1x128xf32>
    %14 = arith.addf %12, %13 : vector<1x128xf32>
    %15 = math.rsqrt %14 : vector<1x128xf32>
    %16 = vector.broadcast %15 : vector<1x128xf32> to vector<32x128xf32>
    %17 = arith.mulf %7, %16 : vector<32x128xf32>
    %c0_6 = arith.constant 0 : index
    %c0_7 = arith.constant 0 : index
    %18 = vector.load %arg3[%c0_6, %c0_7] : memref<32x1xf32, #tpu.memory_space<vmem>>, vector<32x1xf32>
    %19 = vector.broadcast %18 : vector<32x1xf32> to vector<32x128xf32>
    %20 = arith.mulf %17, %19 : vector<32x128xf32>
    %c0_8 = arith.constant 0 : index
    %c0_9 = arith.constant 0 : index
    %21 = vector.load %arg4[%c0_8, %c0_9] : memref<32x1xf32, #tpu.memory_space<vmem>>, vector<32x1xf32>
    %22 = vector.broadcast %21 : vector<32x1xf32> to vector<32x128xf32>
    %23 = arith.addf %20, %22 : vector<32x128xf32>
    %c0_10 = arith.constant 0 : index
    %c0_11 = arith.constant 0 : index
    %c0_12 = arith.constant 0 : index
    %24 = vector.load %arg5[%c0_10, %c0_11, %c0_12] : memref<1x32x128xf32, #tpu.memory_space<vmem>>, vector<1x32x128xf32>
    %25 = vector.shape_cast %24 : vector<1x32x128xf32> to vector<32x128xf32>
    %26 = vector.shape_cast %23 : vector<32x128xf32> to vector<1x32x128xf32>
    tpu.vector_store %arg5[%c0_10, %c0_11, %c0_12], %26 {strides = array<i32>} : memref<1x32x128xf32, #tpu.memory_space<vmem>>, vector<1x32x128xf32>,
    return
  }
  func.func @transform_0(%arg0: i32, %arg1: i32) -> (i32, i32, i32) {
    %c0_i32 = arith.constant 0 : i32
    %c0_i32_0 = arith.constant 0 : i32
    return %arg0, %c0_i32, %arg1 : i32, i32, i32
  }
  func.func @transform_1(%arg0: i32, %arg1: i32) -> (i32, i32) {
    %c0_i32 = arith.constant 0 : i32
    %c0_i32_0 = arith.constant 0 : i32
    %c0_i32_1 = arith.constant 0 : i32
    return %c0_i32, %c0_i32_0 : i32, i32
  }
  func.func @transform_2(%arg0: i32, %arg1: i32) -> (i32, i32) {
    %c0_i32 = arith.constant 0 : i32
    %c0_i32_0 = arith.constant 0 : i32
    %c0_i32_1 = arith.constant 0 : i32
    return %c0_i32, %c0_i32_0 : i32, i32
  }
  func.func @transform_3(%arg0: i32, %arg1: i32) -> (i32, i32, i32) {
    %c0_i32 = arith.constant 0 : i32
    %c0_i32_0 = arith.constant 0 : i32
    return %arg0, %c0_i32, %arg1 : i32, i32, i32
  }
}

</mosaic_0001>

<bundles_post_ra>
// kernel: tpu_custom_call.1
= control target key start
LH: loop header
LB: loop body
LE: loop exit
PB: predicated region body
PF: predicated region fallthrough
CT: control target
= control target key end

     0   :  { %8 = vsyncpa [#allocation3], 0  ;;  %s860_s0 = inlined_call_operand.hbm [shape: f32[2,32,256], index: 0, kind: input, shape index: {}]   ;;  %s861_s1 = inlined_call_operand.vmem [shape: f32[32,1], index: 1, kind: input, shape index: {}]   ;;  %s862_s2 = inlined_call_operand.vmem [shape: f32[32,1], index: 2, kind: input, shape index: {}]   ;;  %s863_s3 = inlined_call_operand.hbm [shape: f32[2,32,256], index: 3, kind: output, shape index: {}]  }
   0x1   :  { %10 = vsyncpa [#allocation3 + $0x1], 0 }
   0x2   :  { %11 = vsyncpa [#allocation4], 0 }
   0x3   :  { %13 = vsyncpa [#allocation4 + $0x1], 0  ;;  %s666_s12 = smov 0   ;;  %s668_s13 = smov 0  }
   0x4   :  { %s670_s14 = smov 0   ;;  %s672_s15 = smov 0  }
   0x5   :  { %s674_s16 = smov 0   ;;  %s676_s17 = smov 0  }
   0x6   :  { %s678_s18 = smov 0   ;;  %s680_s19 = smov 0  }
   0x7 LB: > { %s407_s20 = sadd.s32 4294967295, %s635_s19   ;;  %s408_s21 = sadd.s32 4294967294, %s635_s19   ;;  %s635_s19 = sphi %s680_s19, %s19_s19   ;;  %s631_s18 = sphi %s678_s18, %s881_s18   ;;  %s627_s17 = sphi %s676_s17, %s880_s17   ;;  %s623_s16 = sphi %s674_s16, %s879_s16   ;;  %s619_s15 = sphi %s672_s15, %s878_s15   ;;  %s615_s14 = sphi %s670_s14, %s877_s14   ;;  %s611_s13 = sphi %s668_s13, %s876_s13   ;;  %s607_s12 = sphi %s666_s12, %s875_s12  }
   0x8   : > { %s28_s22 = sadd.s32 1, %s627_s17  ;;  %s31_s23 = sadd.s32 1, %s631_s18 }
   0x9   : > { %p29_p0 = scmp.ge.s32.totalorder %s28_s22, 2  ;;  %s40_s24 = sadd.s32 1, %s615_s14 }
   0xa   : > { %p47_p1 = scmp.ne.s32.totalorder %s615_s14, %s611_s13  ;;  %p48_p2 = scmp.eq.s32.totalorder %s635_s19, 0 }
   0xb   : > { %s883_s22 = smov (%p29_p0, %s28_s22), 0  ;;  %s885_s23 = smov (!%p29_p0, %s31_s23), %s631_s18 }
   0xc   : > { %866 = sst [smem:[#allocation8_spill]] %s883_s22  ;;  %s36_s25 = ssub.s32 %s627_s17, %s883_s22 }
   0xd   : > { %p719_p3 = por %p48_p2, %p47_p1  ;;  %p33_p4 = scmp.ge.s32.totalorder %s885_s23, 2 }
   0xe   : > { %p53_p5 = scmp.ne.s32.totalorder %s611_s13, %s607_s12  ;;  %p54_p6 = scmp.eq.s32.totalorder %s407_s20, 0 }
   0xf   : > { %p121_p7 = scmp.eq.s32.totalorder %s407_s20, 3  ;;  %s887_s23 = smov (%p33_p4, %s885_s23), 0 }
  0x10   : > { %868 = sst [smem:[#allocation9_spill]] %s887_s23  ;;  %p727_p8 = por %p54_p6, %p53_p5 }
  0x11   : > { %p731_p9 = por %p121_p7, %p47_p1  ;;  %s35_s29 = ssub.s32 %s631_s18, %s887_s23 }
  0x12   : > { %p127_p10 = scmp.eq.s32.totalorder %s408_s21, 3  ;;  %s37_s30 = sor.u32 %s36_s25, %s35_s29 }
  0x13   : > { %p38_p11 = scmp.eq.s32.totalorder %s37_s30, 0  ;;  %p434_p13 = scmp.lt.s32.totalorder %s635_s19, 4 }
  0x14   : > { %p737_p12 = por %p127_p10, %p53_p5  ;;  %s153_s5 = sand.u32 1, %s615_s14  }
  0x15   : > { %s744_s6 = scalar_select %p38_p11, %s615_s14, %s40_s24  }
  0x16   : > { %s411_s7 = sshll.u32 %s153_s5, 5  ;;  %s412_s8 = sshll.u32 %s631_s18, 3 }
  0x17   : > { %s162_s9 = sadd.s32 %s627_s17, %s412_s8  ;;  %s157_s10 = scalar_lea.vmem [#allocation2], %s411_s7 }
  0x18   : > { %s165_s11 = sshll.u32 %s157_s10, 4  ;;  %s413_s20 = sshll.u32 %s162_s9, 7  ;;  %s166_s11 = int_to_ptr.vmem [resolvable:$true] %s165_s11 }
  0x19   : > { %s164_s21 = scalar_lea.hbm %s860_s0, %s413_s20  ;;  %p753_p0 = pnand %p434_p13, %p719_p3 }
  0x1a   : > { %s154_s29 = scalar_lea.sflag [#allocation3], %s153_s5  ;;  %s524_s24 = scalar_lea.vmem %s166_s11, 512 }
  0x1b   : > { %p513_p1 = pneg %p753_p0  ;;  %p525_p2 = scmp.ne.s32.totalorder %s166_s11, %s524_s24 }
  0x1c   : > { %s637_s30 = smov [#allocation2]  }
  0x1d   : > { %p527_p4 = pnand %p525_p2, %p513_p1  ;;  %s529_s7 = sshll.u32 %s637_s30, 4  ;;  %s530_s7 = int_to_ptr.vmem [resolvable:$false] %s529_s7 }
  0x1e   : > { %s531_s8 = scalar_lea.vmem %s530_s7, 1024  ;;  %p532_p6 = scmp.lt.s32.totalorder %s166_s11, %s530_s7 }
  0x1f   : > { %p528_p5 = pneg %p527_p4  ;;  %p533_p7 = scmp.lt.s32.totalorder %s531_s8, %s524_s24 }
  0x21   : > { %p534_p10 = por %p533_p7, %p532_p6 }
  0x23   : > { %p535_p11 = pnand %p534_p10, %p528_p5 }
  0x25   : > { %538 = shalt.err (!%p535_p11)
}
  0x26   : > { %s638_s22 = smov 256   ;;  %s639_s23 = smov 128  }
  0x27   : > { %s640_s26 = smov 8   ;;  %p414_p3 = scmp.ge.s32.totalorder %s635_s19, 1 }
  0x28   : > { %429 = dma.hbm_to_vmem [thread:$0]  (!%p753_p0), %s164_s21, 512, %s166_s11, %s154_s29, %s638_s22, %s639_s23, %s640_s26  }
  0x29   : > { %p173_p13 = scmp.lt.s32.totalorder %s635_s19, 5 }
  0x2b   : > { %p174_p1 = pnand %p414_p3, %p173_p13 }
  0x2c   : > { %s764_s5 = sand.u32 (!%p174_p1), 1, %s611_s13  }
  0x2d   : > { %177 = sbr.rel (%p174_p1) target bundleno = 206 (0xce), region = 32  ;;  %s415_s9 = sshll.u32 (!%p174_p1), %s764_s5, 5 }
  0x2e   : > { %s180_s10 = scalar_lea.sflag (!%p174_p1), [#allocation3], %s764_s5  ;;  %s183_s20 = scalar_lea.vmem (!%p174_p1), [#allocation2], %s415_s9 }
  0x32   : > { %598 = dma.done.wait (%p727_p8), %s180_s10, 512  }
  0x33   : > { %600 = vsyncadd (%p727_p8), %s180_s10, 4294966784  ;;  %v641_v0 = vmov 0   ;;  %v246_v1 = vld [vmem:[%s861_s1 + $0x10] sm:$0xff]  ;;  %v244_v2 = vld [vmem:[%s861_s1] sm:$0xff]  ;;  %s205_s24 = scalar_lea.vmem [#allocation5], %s415_s9  ;;  %s305_s27 = scalar_lea.sflag [#allocation4], %s764_s5 }
  0x34   : > { %508 = vset.pattern.permute.xlu1 %v641_v0  ;;  %507 = vset.pattern.permute.xlu0 %v641_v0  ;;  %v247_v3 = vld [vmem:[%s861_s1 + $0x18] sm:$0xff]  ;;  %v245_v4 = vld [vmem:[%s861_s1 + $0x8] sm:$0xff]  ;;  %v272_v6 = vld [vmem:[%s862_s2] sm:$0xff]  ;;  %s319_s30 = sshll.u32 %s205_s24, 4  ;;  %s642_s22 = smov [#allocation5]   ;;  %s802_s30 = int_to_ptr.vmem [resolvable:$true] %s319_s30 }
  0x35   : > { %260 = vperm.xlu1 %508, %v246_v1   ;;  %250 = vperm.xlu0 %507, %v244_v2   ;;  %v273_v5 = vld [vmem:[%s862_s2 + $0x8] sm:$0xff]  ;;  %v275_v7 = vld [vmem:[%s862_s2 + $0x18] sm:$0xff]  ;;  %v274_v8 = vld [vmem:[%s862_s2 + $0x10] sm:$0xff]  ;;  %s539_s8 = scalar_lea.vmem %s802_s30, 512  ;;  %s543_s23 = sshll.u32 %s642_s22, 4  ;;  %s544_s23 = int_to_ptr.vmem [resolvable:$false] %s543_s23 }
  0x36   : > { %v206_v9 = vld [vmem:[%s183_s20] sm:$0xff]  ;;  %v207_v10 = vld [vmem:[%s183_s20 + $0x8] sm:$0xff]  ;;  %v208_v12 = vld [vmem:[%s183_s20 + $0x10] sm:$0xff]  ;;  %p540_p8 = scmp.ne.s32.totalorder %s802_s30, %s539_s8  ;;  %s545_s26 = scalar_lea.vmem %s544_s23, 1024 }
  0x37   : > { %v210_v11 = vadd.f32 %v207_v10, %v206_v9  ;;  %v209_v14 = vld [vmem:[%s183_s20 + $0x18] sm:$0xff]  ;;  %s418_s20 = sshll.u32 %s623_s16, 3  ;;  %p546_p4 = scmp.lt.s32.totalorder %s802_s30, %s544_s23 }
  0x38   : > { %s316_s29 = sadd.s32 %s619_s15, %s418_s20  ;;  %p541_p0 = pnand %p540_p8, %p731_p9 }
  0x39   : > { %265 = vperm.xlu1 %508, %v247_v3   ;;  %255 = vperm.xlu0 %507, %v245_v4   ;;  %v211_v13 = vadd.f32 %v210_v11, %v208_v12  ;;  %s419_s7 = sshll.u32 %s316_s29, 7  ;;  %p547_p5 = scmp.lt.s32.totalorder %s545_s26, %s539_s8 }
  0x3a   : > { %s807_s9 = scalar_lea.hbm %s863_s3, %s419_s7  ;;  %p542_p2 = pneg %p541_p0 }
  0x3b   : > { %v212_v15 = vadd.f32 %v211_v13, %v209_v14  ;;  %p548_p6 = por %p547_p5, %p546_p4 }
  0x3d   : > { %283 = vperm.xlu1 %508, %v273_v5   ;;  %278 = vperm.xlu0 %507, %v272_v6   ;;  %v213_v16 = vrot.slane %v212_v15, 4  ;;  %p549_p7 = pnand %p548_p6, %p542_p2 }
  0x3f   : > { %v214_v17 = vadd.f32 %v213_v16, %v212_v15 }
  0x41   : > { %293 = vperm.xlu1 %508, %v275_v7   ;;  %288 = vperm.xlu0 %507, %v274_v8   ;;  %v215_v18 = vrot.slane %v214_v17, 2 }
  0x43   : > { %v216_v19 = vadd.f32 %v215_v18, %v214_v17 }
  0x45   : > { %v217_v20 = vrot.slane %v216_v19, 1 }
  0x47   : > { %v218_v21 = vadd.f32 %v217_v20, %v216_v19 }
  0x49   : > { %v219_v22 = vmul.f32 0.03125, %v218_v21 }
  0x4b   : > { %v220_v23 = vsub.f32 %v206_v9, %v219_v22  ;;  %v221_v24 = vsub.f32 %v207_v10, %v219_v22  ;;  %v222_v25 = vsub.f32 %v208_v12, %v219_v22  ;;  %v223_v28 = vsub.f32 %v209_v14, %v219_v22 }
  0x4d   : > { %v224_v26 = vmul.f32 %v220_v23, %v220_v23  ;;  %v225_v27 = vmul.f32 %v221_v24, %v221_v24  ;;  %v226_v29 = vmul.f32 %v222_v25, %v222_v25  ;;  %v227_v31 = vmul.f32 %v223_v28, %v223_v28 }
  0x4f   : > { %v228_v30 = vadd.f32 %v225_v27, %v224_v26 }
  0x51   : > { %v229_v32 = vadd.f32 %v228_v30, %v226_v29 }
  0x53   : > { %v230_v33 = vadd.f32 %v229_v32, %v227_v31 }
  0x55   : > { %v231_v34 = vrot.slane %v230_v33, 4 }
  0x57   : > { %v232_v35 = vadd.f32 %v231_v34, %v230_v33 }
  0x59   : > { %v233_v36 = vrot.slane %v232_v35, 2 }
  0x5b   : > { %v234_v37 = vadd.f32 %v233_v36, %v232_v35 }
  0x5d   : > { %v235_v38 = vrot.slane %v234_v37, 1 }
  0x5f   : > { %v236_v39 = vadd.f32 %v235_v38, %v234_v37 }
  0x61   : > { %v237_v40 = vmul.f32 0.03125, %v236_v39 }
  0x63   : > { %v238_v41 = vadd.f32 1e-06, %v237_v40 }
  0x65   : > { %509 = vrsqrt.f32 %v238_v41 }
  0x72   : > { %v510_v42 = vpop.eup %509 }
  0x73   : > { %v240_v45 = vmul.f32 %v510_v42, %v220_v23  ;;  %v241_v46 = vmul.f32 %v510_v42, %v221_v24  ;;  %v242_v49 = vmul.f32 %v510_v42, %v222_v25  ;;  %v243_v51 = vmul.f32 %v510_v42, %v223_v28 }
  0xb0   : > { %v261_v43 = vpop.permute.xlu1 %260  ;;  %v251_v44 = vpop.permute.xlu0 %250 }
  0xb1   : > { %v268_v50 = vmul.f32 %v251_v44, %v240_v45  ;;  %v270_v57 = vmul.f32 %v261_v43, %v242_v49 }
  0xb4   : > { %v266_v47 = vpop.permute.xlu1 %265  ;;  %v256_v48 = vpop.permute.xlu0 %255 }
  0xb5   : > { %v269_v52 = vmul.f32 %v256_v48, %v241_v46  ;;  %v271_v58 = vmul.f32 %v266_v47, %v243_v51 }
  0xb8   : > { %v284_v53 = vpop.permute.xlu1 %283  ;;  %v279_v54 = vpop.permute.xlu0 %278 }
  0xb9   : > { %v297_v55 = vadd.f32 %v284_v53, %v269_v52  ;;  %v296_v56 = vadd.f32 %v279_v54, %v268_v50 }
  0xbb   : > { %301 = vst [vmem:[%s205_s24 + $0x8] sm:$0xff] %v297_v55  ;;  %300 = vst [vmem:[%s205_s24] sm:$0xff] %v296_v56 }
  0xbc   : > { %v294_v59 = vpop.permute.xlu1 %293  ;;  %v289_v60 = vpop.permute.xlu0 %288 }
  0xbd   : > { %v299_v61 = vadd.f32 %v294_v59, %v271_v58  ;;  %v298_v62 = vadd.f32 %v289_v60, %v270_v57 }
  0xbf   : > { %303 = vst [vmem:[%s205_s24 + $0x18] sm:$0xff] %v299_v61  ;;  %302 = vst [vmem:[%s205_s24 + $0x10] sm:$0xff] %v298_v62 }
  0xc0   : > { %552 = shalt.err (!%p549_p7)
}
  0xc1   : > { %s553_s10 = scalar_lea.hbm %s807_s9, 512  ;;  %s557_s25 = scalar_lea.hbm %s863_s3, 2048 }
  0xc2   : > { %p554_p10 = scmp.ne.s32.totalorder %s807_s9, %s553_s10  ;;  %p558_p13 = scmp.lt.s32.totalorder %s807_s9, %s863_s3 }
  0xc3   : > { %p559_p1 = scmp.lt.s32.totalorder %s557_s25, %s553_s10 }
  0xc4   : > { %p555_p11 = pnand %p554_p10, %p731_p9 }
  0xc5   : > { %p560_p8 = por %p559_p1, %p558_p13 }
  0xc6   : > { %p556_p3 = pneg %p555_p11 }
  0xc8   : > { %p561_p0 = pnand %p560_p8, %p556_p3 }
  0xca   : > { %564 = shalt.err (!%p561_p0)
}
  0xcb   : > { %s643_s24 = smov 128   ;;  %s644_s7 = smov 256  }
  0xcc   : > { %s645_s15 = smov 8  }
  0xcd   : > { %424 = dma.vmem_to_hbm [thread:$0]  (%p731_p9), %s802_s30, 512, %s807_s9, %s305_s27, %s643_s24, %s644_s7, %s645_s15  }
  0xce PF: > { %p435_p2 = scmp.ge.s32.totalorder %s635_s19, 2  ;;  %s334_s16 = sand.u32 1, %s607_s12  }
  0xcf   : > { %s335_s8 = scalar_lea.sflag [#allocation4], %s334_s16 }
  0xd0   : > { %p431_p4 = pnand %p435_p2, %p737_p12 }
  0xd2   : > { %p432_p5 = pneg %p431_p4 }
  0xd4   : > { %602 = dma.done.wait (%p432_p5), %s335_s8, 512  }
  0xd5   : > { %604 = vsyncadd (%p432_p5), %s335_s8, 4294966784  ;;  %s19_s19 = sadd.s32 1, %s635_s19   ;;  %s873_s28 = sld [smem:[#allocation8_spill]] }
  0xd6   : > { %p16_p6 = scmp.ge.s32.totalorder %s19_s19, 6   ;;  %s874_s5 = sld [smem:[#allocation9_spill]] }
  0xd7   : > { %s875_s12 = smov %s611_s13  ;;  %s876_s13 = smov %s615_s14 }
  0xd8   : > { %s877_s14 = smov %s744_s6  ;;  %s878_s15 = smov %s627_s17 }
  0xd9   : > { %s879_s16 = smov %s631_s18  ;;  %18 = sbr.rel (!%p16_p6) target bundleno = 7 (0x7), region = 77 }
  0xdb   : > { %s880_s17 = smov %s873_s28 }
  0xdc   : > { %s881_s18 = smov %s874_s5 }
  0xde   :  { %340 = vsyncpa [#allocation3], 1 }
  0xdf   :  { %342 = vsyncpa [#allocation3 + $0x1], 1 }
  0xe0   :  { %343 = vsyncpa [#allocation4], 1 }
  0xe1   :  { %345 = vsyncpa [#allocation4 + $0x1], 1 }

</bundles_post_ra>
